<compile_context>
chip_gen: v7x
topology: tpu7x:2x2x1
jax: 0.10.0
libtpu: 0.0.40
codegen_flags: <defaults>
</compile_context>

<pallas_src>
import functools

import jax
import jax.numpy as jnp
from jax.experimental import pallas as pl
from jax.experimental.pallas import tpu as pltpu

_LANE = 128
_SUBLANE = 8


def _round_up(x, m):
    return ((x + m - 1) // m) * m


def _orthogonal(key, shape, gain):
    """Deterministic orthogonal init (same semantics as torch.nn.init.orthogonal_)."""
    rows, cols = shape
    n = max(rows, cols)
    a = jax.random.normal(key, (n, n), dtype=jnp.float32)
    q, r = jnp.linalg.qr(a)
    q = q * jnp.sign(jnp.diag(r))[None, :]  # sign fix -> unique decomposition
    return (gain * q[:rows, :cols]).astype(jnp.float32)


def init_vnetwork_params(key, num_inputs, hidden_dim):
    """Logical (unpadded) params; weights stored as (in, out) = W.T vs PyTorch."""
    k1, k2, k3 = jax.random.split(key, 3)
    std = float(jnp.sqrt(2.0))
    w1 = _orthogonal(k1, (hidden_dim, num_inputs), std).T   # (in, hidden)
    w2 = _orthogonal(k2, (hidden_dim, hidden_dim), std).T   # (hidden, hidden)
    w3 = _orthogonal(k3, (1, hidden_dim), 1.0).T             # (hidden, 1), std=1.0
    b1 = jnp.zeros((hidden_dim,), jnp.float32)
    b2 = jnp.zeros((hidden_dim,), jnp.float32)
    b3 = jnp.zeros((), jnp.float32)
    return w1, b1, w2, b2, w3, b3


def pad_vnetwork_params(params, num_inputs, hidden_dim):
    """Zero-pad feature dims to TPU-friendly shapes (math unchanged: pads are 0).

    w3 is stored as a (1, h_pad) row vector so the last layer is a VPU multiply +
    lane reduce instead of a mostly-zero 128-wide MXU pass.
    """
    w1, b1, w2, b2, w3, b3 = params
    in_pad = _round_up(num_inputs, _SUBLANE)
    h_pad = _round_up(hidden_dim, _LANE)
    w1p = jnp.zeros((in_pad, h_pad), jnp.float32).at[:num_inputs, :hidden_dim].set(w1)
    w2p = jnp.zeros((h_pad, h_pad), jnp.float32).at[:hidden_dim, :hidden_dim].set(w2)
    w3p = jnp.zeros((1, h_pad), jnp.float32).at[0, :hidden_dim].set(w3[:, 0])
    b1p = jnp.zeros((1, h_pad), jnp.float32).at[0, :hidden_dim].set(b1)
    b2p = jnp.zeros((1, h_pad), jnp.float32).at[0, :hidden_dim].set(b2)
    b3p = jnp.reshape(b3, (1, 1)).astype(jnp.float32)
    return w1p, b1p, w2p, b2p, w3p, b3p


def vnetwork_kernel(x_ref, w1_ref, b1_ref, w2_ref, b2_ref, w3_ref, b3_ref, o_ref):
    x = x_ref[...]
    h1 = jnp.tanh(
        jnp.dot(x, w1_ref[...], preferred_element_type=jnp.float32) + b1_ref[...]
    )
    h2 = jnp.tanh(
        jnp.dot(h1, w2_ref[...], preferred_element_type=jnp.float32) + b2_ref[...]
    )
    # Final layer: elementwise multiply by the (1, h_pad) w3 row (VPU) and reduce
    # over lanes (XLU), producing a single-lane column.  b3 is a scalar in SMEM.
    v = jnp.sum(h2 * w3_ref[...], axis=-1, keepdims=True) + b3_ref[0, 0]
    o_ref[...] = v


@functools.partial(jax.jit, static_argnames=("block_b",))
def vnetwork_forward(state, w1p, b1p, w2p, b2p, w3p, b3p, *, block_b=4096):
    B, num_inputs = state.shape
    in_pad, h_pad = w1p.shape

    # Feature-dim zero-pad only (and only if needed); no batch-dim padded copy.
    if num_inputs != in_pad:
        state = jnp.pad(state, ((0, 0), (0, in_pad - num_inputs)))

    # Batch tile: multiple of 8 regardless of block_b (tiling constraint), capped so
    # the f32 h1/h2 intermediates stay well inside v5e's scoped VMEM, and capped at
    # ~ceil(B/2) so v7x's second TensorCore has work when B is moderate.
    tb = _round_up(min(block_b, B), _SUBLANE)
    vmem_budget = 8 * 1024 * 1024  # budget for ~4 f32 (tb, h_pad) temporaries
    max_tb_vmem = max(_SUBLANE, (vmem_budget // (4 * 4 * h_pad)) // _SUBLANE * _SUBLANE)
    tb = min(tb, max_tb_vmem)
    if B > _SUBLANE:
        tb = min(tb, _round_up(pl.cdiv(B, 2), _SUBLANE))
    grid = (pl.cdiv(B, tb),)  # last tile may run past B; its rows are discarded

    flops = 2 * B * (in_pad * h_pad + h_pad * h_pad + h_pad)
    bytes_accessed = 4 * (
        B * in_pad + w1p.size + b1p.size + w2p.size + b2p.size + w3p.size + b3p.size + B
    )

    out = pl.pallas_call(
        vnetwork_kernel,
        out_shape=jax.ShapeDtypeStruct((B, 1), jnp.float32),
        grid=grid,
        in_specs=[
            pl.BlockSpec((tb, in_pad), lambda i: (i, 0)),        # state: tiled over batch
            pl.BlockSpec((in_pad, h_pad), lambda i: (0, 0)),     # w1: resident
            pl.BlockSpec((1, h_pad), lambda i: (0, 0)),          # b1: resident
            pl.BlockSpec((h_pad, h_pad), lambda i: (0, 0)),      # w2: resident
            pl.BlockSpec((1, h_pad), lambda i: (0, 0)),          # b2: resident
            pl.BlockSpec((1, h_pad), lambda i: (0, 0)),          # w3 row: resident
            pl.BlockSpec(memory_space=pltpu.MemorySpace.SMEM),   # b3: scalar in SMEM
        ],
        out_specs=pl.BlockSpec((tb, 1), lambda i: (i, 0)),       # single real column
        compiler_params=pltpu.CompilerParams(
            dimension_semantics=("parallel",),      # shard batch tiles across TCs on v7x
            vmem_limit_bytes=32 * 1024 * 1024,      # headroom above v5e's 16 MiB default
        ),
        cost_estimate=pl.CostEstimate(
            flops=flops,
            transcendentals=2 * B * h_pad,  # two tanh layers
            bytes_accessed=bytes_accessed,
        ),
    )(state, w1p, b1p, w2p, b2p, w3p, b3p)

    return out[:, 0]  # matches torch x.squeeze(-1) -> shape (B,)


def vnetwork_reference(state, params):
    w1, b1, w2, b2, w3, b3 = params
    h1 = jnp.tanh(state @ w1 + b1)
    h2 = jnp.tanh(h1 @ w2 + b2)
    return (h2 @ w3 + b3).squeeze(-1)


if __name__ == "__main__":
    key = jax.random.PRNGKey(0)
    k_param, k_state, k_state2 = jax.random.split(key, 3)

    batch = 8
    num_inputs = 16
    hidden_dim = 32

    params = init_vnetwork_params(k_param, num_inputs, hidden_dim)
    padded = pad_vnetwork_params(params, num_inputs, hidden_dim)

    # Small-batch check (single grid step).
    state = jax.random.normal(k_state, (batch, num_inputs), dtype=jnp.float32)
    out = vnetwork_forward(state, *padded)
    jax.block_until_ready(out)
    ref = vnetwork_reference(state, params)
    assert out.shape == (batch,), out.shape
    assert jnp.allclose(out, ref, atol=1e-5, rtol=1e-5), (out, ref)

    # Larger, non-tile-multiple batch: exercises the cdiv grid and the OOB last
    # tile (those rows never appear in the returned result).
    big_batch = 1000
    state2 = jax.random.normal(k_state2, (big_batch, num_inputs), dtype=jnp.float32)
    out2 = vnetwork_forward(state2, *padded, block_b=256)  # 4 batch tiles
    jax.block_until_ready(out2)
    ref2 = vnetwork_reference(state2, params)
    assert out2.shape == (big_batch,), out2.shape
    assert jnp.allclose(out2, ref2, atol=1e-5, rtol=1e-5)

    print("KERNEL_OK")
</pallas_src>

<mosaic_0001>
module attributes {stable_mosaic.version = 11 : i64} {
  func.func @vnetwork_kernel(%arg0: i32, %arg1: memref<8x16xf32, #tpu.memory_space<vmem>>, %arg2: memref<16x128xf32, #tpu.memory_space<vmem>>, %arg3: memref<1x128xf32, #tpu.memory_space<vmem>>, %arg4: memref<128x128xf32, #tpu.memory_space<vmem>>, %arg5: memref<1x128xf32, #tpu.memory_space<vmem>>, %arg6: memref<1x128xf32, #tpu.memory_space<vmem>>, %arg7: memref<1x1xf32, #tpu.memory_space<smem>>, %arg8: memref<8x1xf32, #tpu.memory_space<vmem>>) attributes {dimension_semantics = [#tpu.dimension_semantics<parallel>], iteration_bounds = array<i64: 1>, scalar_prefetch = 0 : i64, scratch_operands = 0 : i64, tpu.core_type = #tpu.core_type<tc>, window_params = [{transform_indices = @transform_0, window_bounds = array<i64: 8, 16>}, {pipeline_mode = #tpu.pipeline_mode<synchronous>, transform_indices = @transform_1, window_bounds = array<i64: 16, 128>}, {pipeline_mode = #tpu.pipeline_mode<synchronous>, transform_indices = @transform_2, window_bounds = array<i64: 1, 128>}, {pipeline_mode = #tpu.pipeline_mode<synchronous>, transform_indices = @transform_3, window_bounds = array<i64: 128, 128>}, {pipeline_mode = #tpu.pipeline_mode<synchronous>, transform_indices = @transform_4, window_bounds = array<i64: 1, 128>}, {pipeline_mode = #tpu.pipeline_mode<synchronous>, transform_indices = @transform_5, window_bounds = array<i64: 1, 128>}, {transform_indices = @transform_6, window_bounds = array<i64: 1, 1>}, {transform_indices = @transform_7, window_bounds = array<i64: 8, 1>}]} {
    %c0 = arith.constant 0 : index
    %c0_0 = arith.constant 0 : index
    %0 = vector.load %arg1[%c0, %c0_0] : memref<8x16xf32, #tpu.memory_space<vmem>>, vector<8x16xf32>
    %c0_1 = arith.constant 0 : index
    %c0_2 = arith.constant 0 : index
    %1 = vector.load %arg2[%c0_1, %c0_2] : memref<16x128xf32, #tpu.memory_space<vmem>>, vector<16x128xf32>
    %cst = arith.constant dense<0.000000e+00> : vector<8x128xf32>
    %2 = tpu.matmul %0, %1, %cst {dimension_numbers = #tpu.dot_dimension_numbers<[1], [0], [0], [1], [0, 0, 1, 1], [], []>} : vector<8x16xf32>, vector<16x128xf32>, vector<8x128xf32> -> vector<8x128xf32>
    %c0_3 = arith.constant 0 : index
    %c0_4 = arith.constant 0 : index
    %3 = vector.load %arg3[%c0_3, %c0_4] : memref<1x128xf32, #tpu.memory_space<vmem>>, vector<1x128xf32>
    %4 = vector.broadcast %3 : vector<1x128xf32> to vector<8x128xf32>
    %5 = arith.addf %2, %4 : vector<8x128xf32>
    %6 = math.tanh %5 : vector<8x128xf32>
    %c0_5 = arith.constant 0 : index
    %c0_6 = arith.constant 0 : index
    %7 = vector.load %arg4[%c0_5, %c0_6] : memref<128x128xf32, #tpu.memory_space<vmem>>, vector<128x128xf32>
    %cst_7 = arith.constant dense<0.000000e+00> : vector<8x128xf32>
    %8 = tpu.matmul %6, %7, %cst_7 {dimension_numbers = #tpu.dot_dimension_numbers<[1], [0], [0], [1], [0, 0, 1, 1], [], []>} : vector<8x128xf32>, vector<128x128xf32>, vector<8x128xf32> -> vector<8x128xf32>
    %c0_8 = arith.constant 0 : index
    %c0_9 = arith.constant 0 : index
    %9 = vector.load %arg5[%c0_8, %c0_9] : memref<1x128xf32, #tpu.memory_space<vmem>>, vector<1x128xf32>
    %10 = vector.broadcast %9 : vector<1x128xf32> to vector<8x128xf32>
    %11 = arith.addf %8, %10 : vector<8x128xf32>
    %12 = math.tanh %11 : vector<8x128xf32>
    %c0_10 = arith.constant 0 : index
    %c0_11 = arith.constant 0 : index
    %13 = vector.load %arg6[%c0_10, %c0_11] : memref<1x128xf32, #tpu.memory_space<vmem>>, vector<1x128xf32>
    %14 = vector.broadcast %13 : vector<1x128xf32> to vector<8x128xf32>
    %15 = arith.mulf %12, %14 : vector<8x128xf32>
    %cst_12 = arith.constant dense<0.000000e+00> : vector<8xf32>
    %16 = vector.multi_reduction <add>, %15, %cst_12 [1] : vector<8x128xf32> to vector<8xf32>
    %17 = vector.shape_cast %16 : vector<8xf32> to vector<8x1xf32>
    %c0_13 = arith.constant 0 : index
    %c0_14 = arith.constant 0 : index
    %18 = memref.load %arg7[%c0_13, %c0_14] : memref<1x1xf32, #tpu.memory_space<smem>>
    %19 = vector.broadcast %18 : f32 to vector<8x1xf32>
    %20 = arith.addf %17, %19 : vector<8x1xf32>
    %c0_15 = arith.constant 0 : index
    %c0_16 = arith.constant 0 : index
    %21 = vector.load %arg8[%c0_15, %c0_16] : memref<8x1xf32, #tpu.memory_space<vmem>>, vector<8x1xf32>
    tpu.vector_store %arg8[%c0_15, %c0_16], %20 {strides = array<i32>} : memref<8x1xf32, #tpu.memory_space<vmem>>, vector<8x1xf32>,
    return
  }
  func.func @transform_0(%arg0: i32) -> (i32, i32) {
    %c0_i32 = arith.constant 0 : i32
    %c0_i32_0 = arith.constant 0 : i32
    return %arg0, %c0_i32 : i32, i32
  }
  func.func @transform_1(%arg0: i32) -> (i32, i32) {
    %c0_i32 = arith.constant 0 : i32
    %c0_i32_0 = arith.constant 0 : i32
    %c0_i32_1 = arith.constant 0 : i32
    return %c0_i32, %c0_i32_0 : i32, i32
  }
  func.func @transform_2(%arg0: i32) -> (i32, i32) {
    %c0_i32 = arith.constant 0 : i32
    %c0_i32_0 = arith.constant 0 : i32
    %c0_i32_1 = arith.constant 0 : i32
    return %c0_i32, %c0_i32_0 : i32, i32
  }
  func.func @transform_3(%arg0: i32) -> (i32, i32) {
    %c0_i32 = arith.constant 0 : i32
    %c0_i32_0 = arith.constant 0 : i32
    %c0_i32_1 = arith.constant 0 : i32
    return %c0_i32, %c0_i32_0 : i32, i32
  }
  func.func @transform_4(%arg0: i32) -> (i32, i32) {
    %c0_i32 = arith.constant 0 : i32
    %c0_i32_0 = arith.constant 0 : i32
    %c0_i32_1 = arith.constant 0 : i32
    return %c0_i32, %c0_i32_0 : i32, i32
  }
  func.func @transform_5(%arg0: i32) -> (i32, i32) {
    %c0_i32 = arith.constant 0 : i32
    %c0_i32_0 = arith.constant 0 : i32
    %c0_i32_1 = arith.constant 0 : i32
    return %c0_i32, %c0_i32_0 : i32, i32
  }
  func.func @transform_6(%arg0: i32) -> (i32, i32) {
    %c0_i32 = arith.constant 0 : i32
    %c0_i32_0 = arith.constant 0 : i32
    %c0_i32_1 = arith.constant 0 : i32
    return %c0_i32, %c0_i32_0 : i32, i32
  }
  func.func @transform_7(%arg0: i32) -> (i32, i32) {
    %c0_i32 = arith.constant 0 : i32
    %c0_i32_0 = arith.constant 0 : i32
    return %arg0, %c0_i32 : i32, i32
  }
}

</mosaic_0001>

<bundles_post_ra>
// kernel: vnetwork_forward.1
= control target key start
LH: loop header
LB: loop body
LE: loop exit
PB: predicated region body
PF: predicated region fallthrough
CT: control target
= control target key end

     0   :  { %13 = vsyncpa [#allocation4], 0  ;;  %s546_s0 = inlined_call_operand.hbm [shape: f32[8,16], index: 0, kind: input, shape index: {}]   ;;  %s547_s1 = inlined_call_operand.hbm [shape: f32[16,128], index: 1, kind: input, shape index: {}]   ;;  %s548_s2 = inlined_call_operand.vmem [shape: f32[1,128], index: 2, kind: input, shape index: {}]   ;;  %s549_s3 = inlined_call_operand.hbm [shape: f32[128,128], index: 3, kind: input, shape index: {}]   ;;  %s550_s4 = inlined_call_operand.vmem [shape: f32[1,128], index: 4, kind: input, shape index: {}]   ;;  %s551_s5 = inlined_call_operand.vmem [shape: f32[1,128], index: 5, kind: input, shape index: {}]   ;;  %s552_s6 = inlined_call_operand.<no memory space> [shape: f32[1,1], index: 6, kind: input, shape index: {}]   ;;  %s553_s7 = inlined_call_operand.vmem [shape: f32[8,1], index: 7, kind: output, shape index: {}]  }
   0x1   :  { %14 = vsyncpa [#allocation6], 0  ;;  %s441_s24 = smov [#allocation5]   ;;  %s371_s28 = scalar_lea.hbm %s547_s1, 256 }
   0x2   :  { %s30_s25 = sshll.u32 %s441_s24, 4  ;;  %p372_p0 = scmp.ne.s32.totalorder %s547_s1, %s371_s28  ;;  %s31_s25 = int_to_ptr.vmem [resolvable:$true] %s30_s25 }
   0x3   :  { %p375_p1 = scmp.lt.u32.totalorder %s371_s28, %s547_s1 }
   0x5   :  { %p377_p2 = pnand %p375_p1, %p372_p0 }
   0x7   :  { %380 = shalt.err (!%p377_p2)
}
   0x8   :  { %s381_s10 = scalar_lea.vmem %s31_s25, 256  ;;  %p386_p4 = scmp.lt.s32.totalorder %s31_s25, %s31_s25 }
   0x9   :  { %p382_p3 = scmp.ne.s32.totalorder %s31_s25, %s381_s10  ;;  %p387_p5 = scmp.lt.s32.totalorder %s381_s10, %s381_s10 }
   0xb   :  { %p388_p6 = por %p387_p5, %p386_p4 }
   0xd   :  { %p389_p7 = pnand %p388_p6, %p382_p3 }
   0xf   :  { %392 = shalt.err (!%p389_p7)
}
  0x10   :  { %s442_s11 = smov 128   ;;  %s443_s12 = smov 8  }
  0x11   :  { %36 = dma.hbm_to_vmem [thread:$0]  %s547_s1, 256, %s31_s25, [#allocation6], %s442_s11, %s442_s11, %s443_s12  }
  0x12   :  { %s444_s15 = smov [#allocation3]   ;;  %s445_s17 = smov [#allocation7]  }
  0x13   :  { %s21_s16 = sshll.u32 %s444_s15, 4  ;;  %s44_s18 = sshll.u32 %s445_s17, 4  ;;  %s22_s16 = int_to_ptr.vmem [resolvable:$true] %s21_s16  ;;  %s45_s18 = int_to_ptr.vmem [resolvable:$true] %s44_s18 }
  0x14   :  { %s393_s21 = scalar_lea.hbm %s546_s0, 128 }
  0x15   :  { %p394_p8 = scmp.ne.s32.totalorder %s546_s0, %s393_s21  ;;  %p397_p9 = scmp.lt.u32.totalorder %s393_s21, %s546_s0 }
  0x17   :  { %p399_p10 = pnand %p397_p9, %p394_p8 }
  0x19   :  { %402 = shalt.err (!%p399_p10)
}
  0x1a   :  { %s403_s1 = scalar_lea.vmem %s22_s16, 128  ;;  %p408_p12 = scmp.lt.s32.totalorder %s22_s16, %s22_s16 }
  0x1b   :  { %p404_p11 = scmp.ne.s32.totalorder %s22_s16, %s403_s1  ;;  %p409_p13 = scmp.lt.s32.totalorder %s403_s1, %s403_s1 }
  0x1d   :  { %p410_p0 = por %p409_p13, %p408_p12 }
  0x1f   :  { %p411_p1 = pnand %p410_p0, %p404_p11 }
  0x21   :  { %414 = shalt.err (!%p411_p1)
}
  0x22   :  { %24 = dma.hbm_to_vmem [thread:$0]  %s546_s0, 128, %s22_s16, [#allocation4]  }
  0x23   :  { %s415_s30 = scalar_lea.hbm %s549_s3, 2048 }
  0x24   :  { %p416_p2 = scmp.ne.s32.totalorder %s549_s3, %s415_s30  ;;  %p419_p3 = scmp.lt.u32.totalorder %s415_s30, %s549_s3 }
  0x26   :  { %p421_p4 = pnand %p419_p3, %p416_p2 }
  0x28   :  { %424 = shalt.err (!%p421_p4)
}
  0x29   :  { %s425_s14 = scalar_lea.vmem %s45_s18, 2048  ;;  %p430_p6 = scmp.lt.s32.totalorder %s45_s18, %s45_s18 }
  0x2a   :  { %p426_p5 = scmp.ne.s32.totalorder %s45_s18, %s425_s14  ;;  %p431_p7 = scmp.lt.s32.totalorder %s425_s14, %s425_s14 }
  0x2c   :  { %p432_p8 = por %p431_p7, %p430_p6 }
  0x2e   :  { %p433_p9 = pnand %p432_p8, %p426_p5 }
  0x30   :  { %436 = shalt.err (!%p433_p9)
}
  0x31   :  { %50 = dma.hbm_to_vmem [thread:$0]  %s549_s3, 2048, %s45_s18, [#allocation6], %s442_s11, %s442_s11, %s443_s12  }
  0x32   :  { %437 = dma.done.wait [#allocation4], 128  }
  0x33   :  { %438 = vsyncadd [#allocation4], 4294967168 }
  0x34   :  { %439 = dma.done.wait [#allocation6], 2304  }
  0x35   :  { %440 = vsyncadd [#allocation6], 4294964992  ;;  %v446_v0 = vmov 0.0|0.0   ;;  %vm447_vm0 = vmmov 0   ;;  %v448_v1 = vmov 0.0   ;;  %v67_v2 = vld [vmem:[#allocation5] sm:$0xff]  ;;  %v256_v42 = vstv %s552_s6 }
  0x36   :  { %332 = vmatprep.subr.bf16.mxu0 %v446_v0  ;;  %294 = vmatprep.mubr.msk.f32.mxu0 %vm447_vm0, %v448_v1  ;;  %v68_v3 = vld [vmem:[#allocation5 + $0x8] sm:$0xff]  ;;  %v151_v5 = vld [vmem:[#allocation7] sm:$0xff]  ;;  %v152_v6 = vld [vmem:[#allocation7 + $0x8] sm:$0xff]  ;;  %vm76_vm1 = vcmask 130048   ;;  %vm258_vm2 = vcmask 7168  }
  0x37   :  { %335 = vmatprep.subr.bf16.mxu1 %v446_v0  ;;  %329 = vmatprep.mubr.msk.f32.mxu1 %vm447_vm0, %v448_v1  ;;  %v333_v4 = vpack.c.bf16 %v68_v3, %v67_v2  ;;  %v153_v7 = vld [vmem:[#allocation7 + $0x10] sm:$0xff]  ;;  %v336_v8 = vpack.c.bf16 %v152_v6, %v151_v5  ;;  %v154_v9 = vld [vmem:[#allocation7 + $0x18] sm:$0xff]  ;;  %v66_v10 = vld [vmem:[#allocation3] sm:$0xff] }
  0x38   :  { %v339_v11 = vpack.c.bf16 %v154_v9, %v153_v7  ;;  %v155_v12 = vld [vmem:[#allocation7 + $0x20] sm:$0xff]  ;;  %v156_v13 = vld [vmem:[#allocation7 + $0x28] sm:$0xff]  ;;  %v157_v15 = vld [vmem:[#allocation7 + $0x30] sm:$0xff] }
  0x39   :  { %334 = vmatpush3.bf16.msra.mxu0 %v333_v4  ;;  %337 = vmatpush3.bf16.msra.mxu1 %v336_v8  ;;  %v342_v14 = vpack.c.bf16 %v156_v13, %v155_v12  ;;  %v158_v16 = vld [vmem:[#allocation7 + $0x38] sm:$0xff]  ;;  %v159_v18 = vld [vmem:[#allocation7 + $0x40] sm:$0xff]  ;;  %v160_v19 = vld [vmem:[#allocation7 + $0x48] sm:$0xff] }
  0x3a   :  { %338 = vmatprep.subr.bf16.mxu1 %v446_v0  ;;  %v345_v17 = vpack.c.bf16 %v158_v16, %v157_v15  ;;  %v348_v20 = vpack.c.bf16 %v160_v19, %v159_v18  ;;  %v161_v21 = vld [vmem:[#allocation7 + $0x50] sm:$0xff]  ;;  %v162_v22 = vld [vmem:[#allocation7 + $0x58] sm:$0xff]  ;;  %v163_v24 = vld [vmem:[#allocation7 + $0x60] sm:$0xff] }
  0x3b   :  { %v351_v23 = vpack.c.bf16 %v162_v22, %v161_v21  ;;  %v164_v25 = vld [vmem:[#allocation7 + $0x68] sm:$0xff]  ;;  %v165_v27 = vld [vmem:[#allocation7 + $0x70] sm:$0xff]  ;;  %v166_v28 = vld [vmem:[#allocation7 + $0x78] sm:$0xff] }
  0x3c   :  { %295 = vmatmul.mubr.msk.f32.vlgmr.msra.gmra.mrb[0].mxu0 %vm76_vm1, %v66_v10  ;;  %v354_v26 = vpack.c.bf16 %v164_v25, %v163_v24  ;;  %v357_v29 = vpack.c.bf16 %v166_v28, %v165_v27  ;;  %v266_v30 = vld [vmem:[%s548_s2] ss:$0 sm:$0xff] }
  0x3d   :  { %340 = vmatpush3.bf16.msra.mxu1 %v339_v11  ;;  %v268_v35 = vld [vmem:[%s550_s4] ss:$0 sm:$0xff] }
  0x3e   :  { %341 = vmatprep.subr.bf16.mxu1 %v446_v0  ;;  %v269_v39 = vld [vmem:[%s551_s5] ss:$0 sm:$0xff] }
  0x41   :  { %343 = vmatpush3.bf16.msra.mxu1 %v342_v14 }
  0x42   :  { %344 = vmatprep.subr.bf16.mxu1 %v446_v0 }
  0x45   :  { %346 = vmatpush3.bf16.msra.mxu1 %v345_v17 }
  0x46   :  { %347 = vmatprep.subr.bf16.mxu1 %v446_v0 }
  0x49   :  { %349 = vmatpush3.bf16.msra.mxu1 %v348_v20 }
  0x4a   :  { %350 = vmatprep.subr.bf16.mxu1 %v446_v0 }
  0x4d   :  { %352 = vmatpush3.bf16.msra.mxu1 %v351_v23 }
  0x4e   :  { %353 = vmatprep.subr.bf16.mxu1 %v446_v0 }
  0x51   :  { %355 = vmatpush3.bf16.msra.mxu1 %v354_v26 }
  0x52   :  { %356 = vmatprep.subr.bf16.mxu1 %v446_v0 }
  0x55   :  { %358 = vmatpush3.bf16.msra.mxu1 %v357_v29 }
 0x10f   :  { %v146_v31 = vpop.f32.mrb[0].mxu0 }
 0x110   :  { %v147_v32 = vadd.f32 %v266_v30, %v146_v31  ;;  %v296_v33 = vpop.f32.mrb[1].mxu0 }
 0x112   :  { %367 = vtanh.f32 %v147_v32 }
 0x11c   :  { %v368_v34 = vpop.eup %367 }
 0x11d   :  { %330 = vmatmul.mubr.f32.vlgmr.msra.gmra.mrb[0].mxu1 %v368_v34 }
 0x1f0   :  { %v240_v36 = vpop.f32.mrb[0].mxu1 }
 0x1f1   :  { %v241_v37 = vadd.f32 %v268_v35, %v240_v36  ;;  %v331_v38 = vpop.f32.mrb[1].mxu1 }
 0x1f3   :  { %369 = vtanh.f32 %v241_v37 }
 0x1fd   :  { %v370_v40 = vpop.eup %369 }
 0x1fe   :  { %v252_v41 = vmul.f32 %v370_v40, %v269_v39 }
 0x200   :  { %253 = vadd.xlane.f32.xlu0 %v252_v41 }
 0x28d   :  { %v254_v43 = vpop.xlane.xlu0 %253 }
 0x28e   :  { %v257_v44 = vadd.f32 %v256_v42, %v254_v43 }
 0x290   :  { %259 = vst.msk [vmem:[%s553_s7] sm:$0xff] %vm258_vm2, %v257_v44 }
 0x291   :  { %264 = vsyncpa [#allocation4], 1 }
 0x292   :  { %265 = vsyncpa [#allocation6], 1 }

</bundles_post_ra>
